<compile_context>
chip_gen: v7x
topology: tpu7x:2x2x1
jax: 0.10.0
libtpu: 0.0.40
codegen_flags: <defaults>
</compile_context>

<pallas_src>
from functools import partial

import jax
import jax.numpy as jnp
from jax.experimental import pallas as pl
from jax.experimental.pallas import tpu as pltpu


_LANES = 128                      # full vreg lane width -> unmasked vst
_TARGET_BLOCK_BYTES = 4 << 20     # ~4 MiB per input block (x4 live buffers = 16 MiB)
_MIN_GRID_STEPS = 4               # keep the pipeline fed / both TCs busy on v7x
_VMEM_LIMIT_BYTES = 48 << 20      # headroom over 4 double-buffered 4 MiB blocks;
                                  # below v7x's 64 MiB physical VMEM
_XLA_FALLBACK_BYTES = 256 << 10   # below this, a fused XLA multiply wins


def _make_neg_scale_kernel(neg_alpha):
    """Kernel with -alpha baked in as a compile-time constant."""
    def kernel(g_ref, o_ref):
        # Weak-typed Python scalar keeps the multiply in the cotangent's native
        # dtype (bf16 stays bf16 on v6e/v7x; Mosaic handles v5e internally).
        o_ref[...] = g_ref[...] * neg_alpha
    return kernel


def _choose_block_rows(rows, itemsize):
    """Pick a block row count: full-vreg packed, <= ~4 MiB, >= 4 grid steps."""
    sub = 8 * max(1, 4 // itemsize)            # rows per fully-packed vreg: 8/16/32
    max_rows_by_bytes = max(sub, _TARGET_BLOCK_BYTES // (_LANES * itemsize))
    target = pl.cdiv(rows, _MIN_GRID_STEPS)    # aim for >= _MIN_GRID_STEPS steps
    block_rows = min(rows, max_rows_by_bytes, target)
    block_rows = ((block_rows + sub - 1) // sub) * sub   # full-vreg multiple
    return min(rows, max(block_rows, sub))


def _grl_bwd_impl(alpha, g):
    neg_alpha = -float(alpha)
    itemsize = jnp.dtype(g.dtype).itemsize
    nbytes = g.size * itemsize

    # Tiny or lane-unaligned cotangents: a fused XLA elementwise multiply is
    # already HBM-roofline optimal (2N bytes) and fuses with neighboring
    # backward ops; running Pallas here would only add pad/concat traffic or
    # launch overhead.
    if nbytes < _XLA_FALLBACK_BYTES or (g.size % _LANES) != 0:
        return g * neg_alpha

    rows = g.size // _LANES
    g2 = g.reshape(rows, _LANES)
    block_rows = _choose_block_rows(rows, itemsize)
    grid = (pl.cdiv(rows, block_rows),)

    out2 = pl.pallas_call(
        _make_neg_scale_kernel(neg_alpha),
        out_shape=jax.ShapeDtypeStruct((rows, _LANES), g.dtype),
        grid=grid,
        in_specs=[pl.BlockSpec((block_rows, _LANES), lambda i: (i, 0))],
        out_specs=pl.BlockSpec((block_rows, _LANES), lambda i: (i, 0)),
        input_output_aliases={0: 0},          # dx overwrites dy in place
        compiler_params=pltpu.CompilerParams(
            dimension_semantics=("parallel",),
            vmem_limit_bytes=_VMEM_LIMIT_BYTES),
        cost_estimate=pl.CostEstimate(
            flops=g.size,
            transcendentals=0,
            bytes_accessed=2 * g.size * itemsize),
    )(g2)

    return out2.reshape(g.shape)


# ---------------------------------------------------------------------------
# custom_vjp: forward is a true identity (no kernel, no HBM copy);
# alpha is a non-differentiable static argument.
# ---------------------------------------------------------------------------
@partial(jax.custom_vjp, nondiff_argnums=(1,))
def gradient_reversal(x, alpha):
    return x  # view_as(x) == identity; nothing to compute or copy


def _grl_fwd(x, alpha):
    return x, None


def _grl_bwd(alpha, _res, g):
    return (_grl_bwd_impl(alpha, g),)


gradient_reversal.defvjp(_grl_fwd, _grl_bwd)


class GradientReversalLayer:
    """JAX/Pallas equivalent of the PyTorch GradientReversalLayer."""

    def __init__(self, alpha):
        self.alpha = alpha

    def __call__(self, x):
        return gradient_reversal(x, self.alpha)


# ---------------------------------------------------------------------------
# Demo
# ---------------------------------------------------------------------------
if __name__ == "__main__":
    key = jax.random.PRNGKey(0)
    layer = GradientReversalLayer(alpha=0.5)

    # layout: NCHW, batch=2, channels=4, spatial=16x16 (spec shape; small ->
    # backward takes the fused-XLA fallback path by design).
    x = jax.random.normal(key, (2, 4, 16, 16), dtype=jnp.float32)
    y = jax.block_until_ready(layer(x))
    assert y.shape == x.shape and y.dtype == x.dtype
    assert bool(jnp.allclose(y, x))
    gx = jax.block_until_ready(jax.grad(lambda a: jnp.sum(layer(a)))(x))
    assert bool(jnp.allclose(gx, -0.5 * jnp.ones_like(x)))

    # Larger f32 cotangent (512 KiB, lane-aligned) -> exercises the Pallas
    # kernel with a 4-step parallel grid.
    k1, k2 = jax.random.split(jax.random.PRNGKey(0))
    x_big = jax.random.normal(k1, (8, 16, 32, 32), dtype=jnp.float32)
    g_big = jax.block_until_ready(jax.grad(lambda a: jnp.sum(layer(a)))(x_big))
    assert bool(jnp.allclose(g_big, -0.5 * jnp.ones_like(x_big)))

    # bf16 cotangent (512 KiB) -> Pallas kernel with dtype-native multiply and
    # 16-row sublane packing.
    x_bf16 = jax.random.normal(k2, (8, 8, 64, 64), dtype=jnp.bfloat16)
    g_bf16 = jax.block_until_ready(jax.grad(
        lambda a: jnp.sum(layer(a).astype(jnp.float32)))(x_bf16))
    assert bool(jnp.allclose(g_bf16.astype(jnp.float32),
                             -0.5 * jnp.ones(x_bf16.shape, jnp.float32)))

    # Lane-unaligned, above-threshold size -> fused XLA fallback path.
    x_odd = jax.random.normal(jax.random.PRNGKey(1), (9, 9, 31, 33),
                              dtype=jnp.float32)
    g_odd = jax.block_until_ready(jax.grad(lambda a: jnp.sum(layer(a)))(x_odd))
    assert bool(jnp.allclose(g_odd, -0.5 * jnp.ones_like(x_odd)))

    # Tiny odd shape -> small-size fallback.
    x_tiny = jax.random.normal(jax.random.PRNGKey(2), (3, 5, 7),
                               dtype=jnp.float32)
    g_tiny = jax.block_until_ready(jax.grad(lambda a: jnp.sum(layer(a)))(x_tiny))
    assert bool(jnp.allclose(g_tiny, -0.5 * jnp.ones_like(x_tiny)))

    print("KERNEL_OK")
</pallas_src>

<mosaic_0001>
module attributes {stable_mosaic.version = 11 : i64} {
  func.func @kernel(%arg0: i32, %arg1: memref<256x128xf32, #tpu.memory_space<vmem>>, %arg2: memref<256x128xf32, #tpu.memory_space<vmem>>) attributes {dimension_semantics = [#tpu.dimension_semantics<parallel>], iteration_bounds = array<i64: 4>, scalar_prefetch = 0 : i64, scratch_operands = 0 : i64, tpu.core_type = #tpu.core_type<tc>, window_params = [{transform_indices = @transform_0, window_bounds = array<i64: 256, 128>}, {transform_indices = @transform_1, window_bounds = array<i64: 256, 128>}]} {
    %c0 = arith.constant 0 : index
    %c0_0 = arith.constant 0 : index
    %0 = vector.load %arg1[%c0, %c0_0] : memref<256x128xf32, #tpu.memory_space<vmem>>, vector<256x128xf32>
    %cst = arith.constant -5.000000e-01 : f32
    %1 = vector.broadcast %cst : f32 to vector<256x128xf32>
    %2 = arith.mulf %0, %1 : vector<256x128xf32>
    %c0_1 = arith.constant 0 : index
    %c0_2 = arith.constant 0 : index
    %3 = vector.load %arg2[%c0_1, %c0_2] : memref<256x128xf32, #tpu.memory_space<vmem>>, vector<256x128xf32>
    tpu.vector_store %arg2[%c0_1, %c0_2], %2 {strides = array<i32>} : memref<256x128xf32, #tpu.memory_space<vmem>>, vector<256x128xf32>,
    return
  }
  func.func @transform_0(%arg0: i32) -> (i32, i32) {
    %c0_i32 = arith.constant 0 : i32
    %c0_i32_0 = arith.constant 0 : i32
    return %arg0, %c0_i32 : i32, i32
  }
  func.func @transform_1(%arg0: i32) -> (i32, i32) {
    %c0_i32 = arith.constant 0 : i32
    %c0_i32_0 = arith.constant 0 : i32
    return %arg0, %c0_i32 : i32, i32
  }
}

</mosaic_0001>

<bundles_post_ra>
// kernel: tpu_custom_call.1
= control target key start
LH: loop header
LB: loop body
LE: loop exit
PB: predicated region body
PF: predicated region fallthrough
CT: control target
= control target key end

     0   :  { %6 = vsyncpa [#allocation3], 0  ;;  %s733_s0 = inlined_call_operand.hbm [shape: f32[1024,128], index: 0, kind: input, shape index: {}, may-alias: {0,1}]   ;;  %s734_s1 = inlined_call_operand.hbm [shape: f32[1024,128], index: 1, kind: output, shape index: {}, may-alias: {0,1}]  }
   0x1   :  { %8 = vsyncpa [#allocation3 + $0x1], 0 }
   0x2   :  { %9 = vsyncpa [#allocation4], 0 }
   0x3   :  { %11 = vsyncpa [#allocation4 + $0x1], 0  ;;  %s500_s6 = smov 0   ;;  %s502_s7 = smov 0  }
   0x4   :  { %s504_s8 = smov 0   ;;  %s506_s9 = smov 0  }
   0x5 LB: > { %s521_s10 = sadd.s32 4294967295, %s482_s9   ;;  %s320_s11 = sadd.s32 4294967294, %s482_s9   ;;  %s482_s9 = sphi %s506_s9, %s746_s9   ;;  %s478_s8 = sphi %s504_s8, %s745_s8   ;;  %s474_s7 = sphi %s502_s7, %s744_s7   ;;  %s470_s6 = sphi %s500_s6, %s743_s6  }
   0x6   : > { %s525_s12 = sadd.s32 1, %s482_s9   ;;  %s24_s13 = sadd.s32 1, %s478_s8 }
   0x7   : > { %s21_s14 = ssub.s32 %s482_s9, %s525_s12  ;;  %p31_p0 = scmp.ne.s32.totalorder %s478_s8, %s474_s7 }
   0x8   : > { %p22_p1 = scmp.eq.s32.totalorder %s21_s14, 0  ;;  %p32_p2 = scmp.eq.s32.totalorder %s482_s9, 0 }
   0x9   : > { %p37_p3 = scmp.ne.s32.totalorder %s474_s7, %s470_s6  ;;  %p38_p4 = scmp.eq.s32.totalorder %s521_s10, 0 }
   0xa   : > { %s537_s15 = scalar_select %p22_p1, %s478_s8, %s24_s13  }
   0xb   : > { %p539_p5 = por %p32_p2, %p31_p0  ;;  %p543_p6 = por %p38_p4, %p37_p3 }
   0xc   : > { %p61_p7 = scmp.eq.s32.totalorder %s521_s10, 3  ;;  %p67_p8 = scmp.eq.s32.totalorder %s320_s11, 3 }
   0xd   : > { %p348_p9 = scmp.lt.s32.totalorder %s482_s9, 4  ;;  %s87_s20 = sand.u32 1, %s478_s8  }
   0xe   : > { %p549_p10 = por %p61_p7, %p31_p0  ;;  %p553_p11 = por %p67_p8, %p37_p3 }
   0xf   : > { %s334_s21 = sshll.u32 %s482_s9, 12  ;;  %s323_s22 = sshll.u32 %s87_s20, 8 }
  0x10   : > { %s738_s18 = scalar_select %p549_p10, 1, 0 }
  0x11   : > { %s739_s19 = scalar_select %p553_p11, 1, 0 }
  0x12   : > { %s562_s25 = scalar_lea.hbm %s733_s0, %s334_s21  ;;  %s91_s26 = scalar_lea.vmem [#allocation2], %s323_s22 }
  0x13   : > { %s98_s27 = sshll.u32 %s91_s26, 4  ;;  %p566_p12 = pnand %p348_p9, %p539_p5  ;;  %s570_s27 = int_to_ptr.vmem [resolvable:$true] %s98_s27 }
  0x14   : > { %s572_s29 = scalar_lea.sflag [#allocation3], %s87_s20  ;;  %s386_s30 = scalar_lea.hbm %s562_s25, 4096 }
  0x15   : > { %p387_p13 = scmp.ne.s32.totalorder %s562_s25, %s386_s30  ;;  %p388_p0 = pneg %p566_p12 }
  0x16   : > { %s391_s4 = scalar_lea.hbm %s733_s0, 16384  ;;  %p392_p3 = scmp.lt.u32.totalorder %s562_s25, %s733_s0 }
  0x17   : > { %p389_p1 = pnand %p388_p0, %p387_p13  ;;  %p393_p4 = scmp.lt.u32.totalorder %s391_s4, %s386_s30 }
  0x18   : > { %p395_p7 = scmp.lt.u32.totalorder %s386_s30, %s562_s25 }
  0x19   : > { %p390_p2 = pneg %p389_p1  ;;  %p394_p5 = por %p393_p4, %p392_p3 }
  0x1b   : > { %p396_p8 = por %p395_p7, %p394_p5 }
  0x1d   : > { %p397_p9 = pnand %p396_p8, %p390_p2 }
  0x1f   : > { %400 = shalt.err (!%p397_p9)
}
  0x20   : > { %s401_s13 = scalar_lea.vmem %s570_s27, 4096  ;;  %s484_s14 = smov [#allocation2]  }
  0x21   : > { %p402_p13 = scmp.ne.s32.totalorder %s570_s27, %s401_s13  ;;  %s406_s16 = sshll.u32 %s484_s14, 4  ;;  %s407_s16 = int_to_ptr.vmem [resolvable:$false] %s406_s16 }
  0x22   : > { %s408_s20 = scalar_lea.vmem %s407_s16, 8192  ;;  %p409_p10 = scmp.lt.s32.totalorder %s570_s27, %s407_s16 }
  0x23   : > { %p404_p1 = pnand %p402_p13, %p388_p0  ;;  %p410_p3 = scmp.lt.s32.totalorder %s408_s20, %s401_s13 }
  0x25   : > { %p405_p11 = pneg %p404_p1  ;;  %p411_p4 = por %p410_p3, %p409_p10 }
  0x27   : > { %p412_p5 = pnand %p411_p4, %p405_p11 }
  0x29   : > { %415 = shalt.err (!%p412_p5)
}
  0x2a   : > { %s485_s21 = smov 128   ;;  %s486_s22 = smov 8  }
  0x2b   : > { %343 = dma.hbm_to_vmem [thread:$0]  (!%p566_p12), %s562_s25, 4096, %s570_s27, %s572_s29, %s485_s21, %s485_s21, %s486_s22  }
  0x2c   : > { %p326_p0 = scmp.ge.s32.totalorder %s482_s9, 1  ;;  %p106_p2 = scmp.lt.s32.totalorder %s482_s9, 5 }
  0x2e   : > { %p107_p7 = pnand %p326_p0, %p106_p2 }
  0x2f   : > { %s603_s23 = sand.u32 (!%p107_p7), 1, %s474_s7  }
  0x30   : > { %110 = sbr.rel (%p107_p7) target bundleno = 96 (0x60), region = 24  ;;  %s327_s24 = sshll.u32 (!%p107_p7), %s603_s23, 8 }
  0x31   : > { %s113_s26 = scalar_lea.sflag (!%p107_p7), [#allocation3], %s603_s23  ;;  %s607_s30 = scalar_lea.vmem (!%p107_p7), [#allocation2], %s327_s24 }
  0x37   : > { %461 = dma.done.wait (%p543_p6), %s113_s26, 4096  }
  0x38   : > { %463 = vsyncadd (%p543_p6), %s113_s26, 4294963200  ;;  %v137_v0 = vld [vmem:[%s607_s30] sm:$0xff]  ;;  %v138_v1 = vld [vmem:[%s607_s30 + $0x8] sm:$0xff]  ;;  %s335_s25 = sshll.u32 %s521_s10, 12  ;;  %s617_s27 = scalar_lea.vmem [#allocation5], %s327_s24 }
  0x39   : > { %v139_v2 = vld [vmem:[%s607_s30 + $0x10] sm:$0xff]  ;;  %s247_s17 = sshll.u32 %s617_s27, 4  ;;  %v169_v3 = vmul.f32 -0.5, %v137_v0  ;;  %v170_v4 = vmul.f32 -0.5, %v138_v1  ;;  %v140_v6 = vld [vmem:[%s607_s30 + $0x18] sm:$0xff]  ;;  %v141_v7 = vld [vmem:[%s607_s30 + $0x20] sm:$0xff]  ;;  %s678_s2 = scalar_lea.hbm %s734_s1, %s335_s25  ;;  %s682_s17 = int_to_ptr.vmem [resolvable:$true] %s247_s17 }
  0x3a   : > { %v171_v5 = vmul.f32 -0.5, %v139_v2  ;;  %v142_v8 = vld [vmem:[%s607_s30 + $0x28] sm:$0xff]  ;;  %v172_v9 = vmul.f32 -0.5, %v140_v6  ;;  %v173_v10 = vmul.f32 -0.5, %v141_v7  ;;  %v143_v12 = vld [vmem:[%s607_s30 + $0x30] sm:$0xff]  ;;  %v144_v13 = vld [vmem:[%s607_s30 + $0x38] sm:$0xff] }
  0x3b   : > { %v174_v11 = vmul.f32 -0.5, %v142_v8  ;;  %v145_v14 = vld [vmem:[%s607_s30 + $0x40] sm:$0xff]  ;;  %201 = vst [vmem:[%s617_s27] sm:$0xff] %v169_v3  ;;  %202 = vst [vmem:[%s617_s27 + $0x8] sm:$0xff] %v170_v4  ;;  %v175_v15 = vmul.f32 -0.5, %v143_v12  ;;  %v176_v16 = vmul.f32 -0.5, %v144_v13  ;;  %v146_v18 = vld [vmem:[%s607_s30 + $0x48] sm:$0xff] }
  0x3c   : > { %203 = vst [vmem:[%s617_s27 + $0x10] sm:$0xff] %v171_v5  ;;  %v177_v17 = vmul.f32 -0.5, %v145_v14  ;;  %v147_v19 = vld [vmem:[%s607_s30 + $0x50] sm:$0xff]  ;;  %v148_v20 = vld [vmem:[%s607_s30 + $0x58] sm:$0xff]  ;;  %204 = vst [vmem:[%s617_s27 + $0x18] sm:$0xff] %v172_v9  ;;  %v178_v21 = vmul.f32 -0.5, %v146_v18 }
  0x3d   : > { %205 = vst [vmem:[%s617_s27 + $0x20] sm:$0xff] %v173_v10  ;;  %206 = vst [vmem:[%s617_s27 + $0x28] sm:$0xff] %v174_v11  ;;  %v179_v22 = vmul.f32 -0.5, %v147_v19  ;;  %v180_v23 = vmul.f32 -0.5, %v148_v20  ;;  %v149_v24 = vld [vmem:[%s607_s30 + $0x60] sm:$0xff]  ;;  %v150_v25 = vld [vmem:[%s607_s30 + $0x68] sm:$0xff] }
  0x3e   : > { %v151_v26 = vld [vmem:[%s607_s30 + $0x70] sm:$0xff]  ;;  %207 = vst [vmem:[%s617_s27 + $0x30] sm:$0xff] %v175_v15  ;;  %208 = vst [vmem:[%s617_s27 + $0x38] sm:$0xff] %v176_v16  ;;  %v181_v27 = vmul.f32 -0.5, %v149_v24  ;;  %v182_v28 = vmul.f32 -0.5, %v150_v25  ;;  %v152_v30 = vld [vmem:[%s607_s30 + $0x78] sm:$0xff] }
  0x3f   : > { %209 = vst [vmem:[%s617_s27 + $0x40] sm:$0xff] %v177_v17  ;;  %v183_v29 = vmul.f32 -0.5, %v151_v26  ;;  %v153_v31 = vld [vmem:[%s607_s30 + $0x80] sm:$0xff]  ;;  %v154_v32 = vld [vmem:[%s607_s30 + $0x88] sm:$0xff]  ;;  %210 = vst [vmem:[%s617_s27 + $0x48] sm:$0xff] %v178_v21  ;;  %v184_v33 = vmul.f32 -0.5, %v152_v30 }
  0x40   : > { %211 = vst [vmem:[%s617_s27 + $0x50] sm:$0xff] %v179_v22  ;;  %212 = vst [vmem:[%s617_s27 + $0x58] sm:$0xff] %v180_v23  ;;  %v185_v34 = vmul.f32 -0.5, %v153_v31  ;;  %v186_v35 = vmul.f32 -0.5, %v154_v32  ;;  %v155_v36 = vld [vmem:[%s607_s30 + $0x90] sm:$0xff]  ;;  %v156_v37 = vld [vmem:[%s607_s30 + $0x98] sm:$0xff] }
  0x41   : > { %v157_v38 = vld [vmem:[%s607_s30 + $0xa0] sm:$0xff]  ;;  %213 = vst [vmem:[%s617_s27 + $0x60] sm:$0xff] %v181_v27  ;;  %214 = vst [vmem:[%s617_s27 + $0x68] sm:$0xff] %v182_v28  ;;  %v187_v39 = vmul.f32 -0.5, %v155_v36  ;;  %v188_v40 = vmul.f32 -0.5, %v156_v37  ;;  %v158_v42 = vld [vmem:[%s607_s30 + $0xa8] sm:$0xff] }
  0x42   : > { %215 = vst [vmem:[%s617_s27 + $0x70] sm:$0xff] %v183_v29  ;;  %v189_v41 = vmul.f32 -0.5, %v157_v38  ;;  %v159_v43 = vld [vmem:[%s607_s30 + $0xb0] sm:$0xff]  ;;  %v160_v44 = vld [vmem:[%s607_s30 + $0xb8] sm:$0xff]  ;;  %216 = vst [vmem:[%s617_s27 + $0x78] sm:$0xff] %v184_v33  ;;  %v190_v45 = vmul.f32 -0.5, %v158_v42 }
  0x43   : > { %217 = vst [vmem:[%s617_s27 + $0x80] sm:$0xff] %v185_v34  ;;  %218 = vst [vmem:[%s617_s27 + $0x88] sm:$0xff] %v186_v35  ;;  %v191_v46 = vmul.f32 -0.5, %v159_v43  ;;  %v192_v47 = vmul.f32 -0.5, %v160_v44  ;;  %v161_v48 = vld [vmem:[%s607_s30 + $0xc0] sm:$0xff]  ;;  %v162_v49 = vld [vmem:[%s607_s30 + $0xc8] sm:$0xff] }
  0x44   : > { %v163_v50 = vld [vmem:[%s607_s30 + $0xd0] sm:$0xff]  ;;  %219 = vst [vmem:[%s617_s27 + $0x90] sm:$0xff] %v187_v39  ;;  %220 = vst [vmem:[%s617_s27 + $0x98] sm:$0xff] %v188_v40  ;;  %v193_v51 = vmul.f32 -0.5, %v161_v48  ;;  %v194_v52 = vmul.f32 -0.5, %v162_v49  ;;  %v164_v54 = vld [vmem:[%s607_s30 + $0xd8] sm:$0xff] }
  0x45   : > { %221 = vst [vmem:[%s617_s27 + $0xa0] sm:$0xff] %v189_v41  ;;  %v195_v53 = vmul.f32 -0.5, %v163_v50  ;;  %v165_v55 = vld [vmem:[%s607_s30 + $0xe0] sm:$0xff]  ;;  %v166_v56 = vld [vmem:[%s607_s30 + $0xe8] sm:$0xff]  ;;  %222 = vst [vmem:[%s617_s27 + $0xa8] sm:$0xff] %v190_v45  ;;  %v196_v57 = vmul.f32 -0.5, %v164_v54 }
  0x46   : > { %223 = vst [vmem:[%s617_s27 + $0xb0] sm:$0xff] %v191_v46  ;;  %224 = vst [vmem:[%s617_s27 + $0xb8] sm:$0xff] %v192_v47  ;;  %v197_v58 = vmul.f32 -0.5, %v165_v55  ;;  %v198_v59 = vmul.f32 -0.5, %v166_v56  ;;  %v167_v60 = vld [vmem:[%s607_s30 + $0xf0] sm:$0xff]  ;;  %v168_v61 = vld [vmem:[%s607_s30 + $0xf8] sm:$0xff] }
  0x47   : > { %225 = vst [vmem:[%s617_s27 + $0xc0] sm:$0xff] %v193_v51  ;;  %226 = vst [vmem:[%s617_s27 + $0xc8] sm:$0xff] %v194_v52  ;;  %v199_v62 = vmul.f32 -0.5, %v167_v60  ;;  %v200_v63 = vmul.f32 -0.5, %v168_v61  ;;  %s234_s10 = scalar_lea.sflag [#allocation4], %s603_s23  ;;  %s416_s3 = scalar_lea.vmem %s682_s17, 4096 }
  0x48   : > { %227 = vst [vmem:[%s617_s27 + $0xd0] sm:$0xff] %v195_v53  ;;  %228 = vst [vmem:[%s617_s27 + $0xd8] sm:$0xff] %v196_v57  ;;  %p417_p6 = scmp.ne.s32.totalorder %s682_s17, %s416_s3  ;;  %p741_p10 = scmp.ne.s32.totalorder %s738_s18, 0 }
  0x49   : > { %229 = vst [vmem:[%s617_s27 + $0xe0] sm:$0xff] %v197_v58  ;;  %230 = vst [vmem:[%s617_s27 + $0xe8] sm:$0xff] %v198_v59  ;;  %s487_s4 = smov [#allocation5]  }
  0x4a   : > { %231 = vst [vmem:[%s617_s27 + $0xf0] sm:$0xff] %v199_v62  ;;  %232 = vst [vmem:[%s617_s27 + $0xf8] sm:$0xff] %v200_v63  ;;  %p418_p11 = pnand %p417_p6, %p741_p10  ;;  %s420_s5 = sshll.u32 %s487_s4, 4  ;;  %s421_s5 = int_to_ptr.vmem [resolvable:$false] %s420_s5 }
  0x4b   : > { %s422_s11 = scalar_lea.vmem %s421_s5, 8192  ;;  %p423_p8 = scmp.lt.s32.totalorder %s682_s17, %s421_s5 }
  0x4c   : > { %p419_p12 = pneg %p418_p11  ;;  %p424_p9 = scmp.lt.s32.totalorder %s422_s11, %s416_s3 }
  0x4e   : > { %p425_p13 = por %p424_p9, %p423_p8 }
  0x50   : > { %p426_p1 = pnand %p425_p13, %p419_p12 }
  0x52   : > { %429 = shalt.err (!%p426_p1)
}
  0x53   : > { %s430_s13 = scalar_lea.hbm %s678_s2, 4096  ;;  %s434_s20 = scalar_lea.hbm %s734_s1, 16384 }
  0x54   : > { %p431_p3 = scmp.ne.s32.totalorder %s678_s2, %s430_s13  ;;  %p435_p0 = scmp.lt.u32.totalorder %s678_s2, %s734_s1 }
  0x55   : > { %p436_p2 = scmp.lt.u32.totalorder %s434_s20, %s430_s13  ;;  %p438_p6 = scmp.lt.u32.totalorder %s430_s13, %s678_s2 }
  0x56   : > { %p432_p4 = pnand %p431_p3, %p741_p10 }
  0x57   : > { %p437_p7 = por %p436_p2, %p435_p0 }
  0x58   : > { %p433_p5 = pneg %p432_p4 }
  0x59   : > { %p439_p11 = por %p438_p6, %p437_p7 }
  0x5b   : > { %p440_p12 = pnand %p439_p11, %p433_p5 }
  0x5d   : > { %443 = shalt.err (!%p440_p12)
}
  0x5e   : > { %s488_s24 = smov 128   ;;  %s489_s26 = smov 8  }
  0x5f   : > { %338 = dma.vmem_to_hbm [thread:$0]  (%p741_p10), %s682_s17, 4096, %s678_s2, %s234_s10, %s488_s24, %s488_s24, %s489_s26  }
  0x60 PF: > { %p349_p8 = scmp.ge.s32.totalorder %s482_s9, 2  ;;  %s262_s30 = sand.u32 1, %s470_s6  }
  0x61   : > { %p742_p9 = scmp.ne.s32.totalorder %s739_s19, 0  ;;  %s263_s25 = scalar_lea.sflag [#allocation4], %s262_s30 }
  0x63   : > { %p345_p13 = pnand %p349_p8, %p742_p9 }
  0x65   : > { %465 = dma.done.wait (!%p345_p13), %s263_s25, 4096  }
  0x66   : > { %467 = vsyncadd (!%p345_p13), %s263_s25, 4294963200  ;;  %p14_p1 = scmp.ge.s32.totalorder %s525_s12, 6   ;;  %s743_s6 = smov %s474_s7 }
  0x67   : > { %s744_s7 = smov %s478_s8  ;;  %s745_s8 = smov %s537_s15 }
  0x68   : > { %s746_s9 = smov %s525_s12  ;;  %16 = sbr.rel (!%p14_p1) target bundleno = 5 (0x5), region = 69 }
  0x6f   :  { %268 = vsyncpa [#allocation3], 1 }
  0x70   :  { %270 = vsyncpa [#allocation3 + $0x1], 1 }
  0x71   :  { %271 = vsyncpa [#allocation4], 1 }
  0x72   :  { %273 = vsyncpa [#allocation4 + $0x1], 1 }

</bundles_post_ra>
